<compile_context>
chip_gen: v7x
topology: tpu7x:2x2x1
jax: 0.10.0
libtpu: 0.0.40
codegen_flags: <defaults>
</compile_context>

<pallas_src>
import functools

import jax
import jax.numpy as jnp
from jax import lax
from jax.experimental import pallas as pl
from jax.experimental.pallas import tpu as pltpu


def _round_up(x: int, m: int) -> int:
    return ((x + m - 1) // m) * m


def _sublane_multiple(dtype) -> int:
    # dtype-correct sublane packing: f32 -> 8, bf16/f16 -> 16, int8/fp8 -> 32.
    return {4: 8, 2: 16, 1: 32}.get(jnp.dtype(dtype).itemsize, 8)


def _largest_tile(total: int, base: int, target: int) -> int:
    """Largest t <= target with t % base == 0 and total % t == 0 (requires total % base == 0)."""
    target = max(base, min(target, total))
    t = (target // base) * base
    while total % t != 0:
        t -= base
    return t


def _make_decoder_kernel(accumulate_in_out: bool, compute_dtype):
    """Kernel refs:
        x_ref: (tm, tk)  activations tile
        w_ref: (tn, tk)  W_dec tile (untransposed; contracted on K = dim 1)
        b_ref: (1,  tn)  bias tile (broadcast over rows)
        o_ref: (tm, tn)  output tile, resident across the K grid axis (last axis)
    """

    def _tile_matmul(x_tile, w_tile):
        if compute_dtype is not None:
            x_tile = x_tile.astype(compute_dtype)
            w_tile = w_tile.astype(compute_dtype)
        # NT contraction: (tm, tk) . (tn, tk)^T -> (tm, tn) == x @ W_dec.T
        # TODO(synk): if the Mosaic dump shows a per-k vxpose of the weight tile in the
        # large-batch MXU-bound regime, store W_dec transposed (d_sae, d_in) persistently
        # and feed canonical (tk, tn) tiles instead (one-time layout choice, not a per-call
        # wrapper transpose).
        return lax.dot_general(
            x_tile,
            w_tile,
            dimension_numbers=(((1,), (1,)), ((), ())),
            preferred_element_type=jnp.float32,
        )

    if accumulate_in_out:
        # f32 output: accumulate straight into the resident output block (no scratch).
        def kernel(x_ref, w_ref, b_ref, o_ref):
            k = pl.program_id(2)

            @pl.when(k == 0)
            def _():
                o_ref[...] = jnp.zeros_like(o_ref)

            o_ref[...] += _tile_matmul(x_ref[...], w_ref[...])

            @pl.when(k == pl.num_programs(2) - 1)
            def _():
                o_ref[...] = o_ref[...] + b_ref[...].astype(o_ref.dtype)

        return kernel

    # Low-precision output: f32 VMEM accumulator, cast once at the last K step.
    def kernel(x_ref, w_ref, b_ref, o_ref, acc_ref):
        k = pl.program_id(2)

        @pl.when(k == 0)
        def _():
            acc_ref[...] = jnp.zeros_like(acc_ref)

        acc_ref[...] += _tile_matmul(x_ref[...], w_ref[...])

        @pl.when(k == pl.num_programs(2) - 1)
        def _():
            o_ref[...] = (acc_ref[...] + b_ref[...].astype(jnp.float32)).astype(o_ref.dtype)

    return kernel


@functools.partial(jax.jit, static_argnames=("tm", "tn", "tk", "weight_dtype"))
def decoder_forward(x, w_dec, b_dec, *, tm=None, tn=None, tk=None, weight_dtype=None):
    """out = x @ w_dec.T + b_dec via a Pallas TPU kernel.

    x:     (batch, d_sae)
    w_dec: (d_in, d_sae)  -- fed untransposed; the transpose happens inside the MXU dot
    b_dec: (d_in,)
    tm/tn/tk: optional tile-size *targets* (auto-clamped to legal, VMEM-fitting tiles)
    weight_dtype: optional dtype (e.g. jnp.bfloat16) W_dec is streamed in. Set it to
      halve the dominant HBM read; accumulation stays f32.
    """
    M, K = x.shape
    N, K_w = w_dec.shape
    assert K_w == K, "w_dec must have shape (d_in, d_sae) matching x's d_sae"
    assert b_dec.shape == (N,)

    if weight_dtype is not None:
        # TODO(synk): for the full ~2x HBM win, keep the decoder params stored in this
        # dtype persistently; casting here still pays one extra read+write per call.
        w_dec = w_dec.astype(weight_dtype)

    out_dtype = x.dtype
    accumulate_in_out = jnp.dtype(out_dtype) == jnp.dtype(jnp.float32)
    x_bytes = jnp.dtype(x.dtype).itemsize
    w_bytes = jnp.dtype(w_dec.dtype).itemsize
    o_bytes = jnp.dtype(out_dtype).itemsize

    if weight_dtype is not None:
        compute_dtype = jnp.dtype(weight_dtype)       # also cast x tile in-kernel (free)
    elif x.dtype != w_dec.dtype:
        compute_dtype = jnp.promote_types(x.dtype, w_dec.dtype)
    else:
        compute_dtype = None

    # ---- Generation-aware VMEM budget (v7x: 64 MiB/TC, v5e/v6e: 128 MiB) ----
    try:
        vmem_cap = int(pltpu.get_tpu_info().vmem_capacity_bytes)
    except Exception:
        vmem_cap = 64 * 1024 * 1024                   # assume smallest (v7x per-core)
    vmem_limit = max(32 << 20, vmem_cap - (8 << 20))
    budget = max(24 << 20, vmem_limit - (16 << 20))   # headroom for Mosaic internals

    # ---- N (d_in): never pad W_dec unless unavoidable ----
    tn_target = 512 if tn is None else tn
    if N % 128 == 0:
        if tn is None and N >= 256:
            # Prefer >=2 N tiles so a v7x megacore split lands on the j axis
            # (splitting N, unlike M, does not duplicate W_dec HBM traffic).
            tn_target = min(tn_target, N // 2)
        tn_eff, N_pad = _largest_tile(N, 128, tn_target), N
    elif N <= 2048:
        tn_eff, N_pad = N, N                          # full-dim block: always legal, no pad
    else:
        N_pad = _round_up(N, 128)                     # rare: large ragged d_in
        tn_eff = _largest_tile(N_pad, 128, tn_target)

    # ---- K (d_sae, contraction): never pad W_dec unless unavoidable ----
    tk_target = 4096 if tk is None else tk
    if K % 128 == 0:
        tk_eff, K_pad = _largest_tile(K, 128, tk_target), K
    elif K <= 8192:
        tk_eff, K_pad = K, K                          # full-dim block: always legal, no pad
    else:
        K_pad = _round_up(K, 128)                     # rare: large ragged d_sae
        tk_eff = _largest_tile(K_pad, 128, tk_target)

    # Keep the double-buffered weight tile within ~half the VMEM budget.
    while 2 * tn_eff * tk_eff * w_bytes > budget // 2:
        if tk_eff % 256 == 0 and K_pad % (tk_eff // 2) == 0:
            tk_eff //= 2
        elif tn_eff % 256 == 0 and N_pad % (tn_eff // 2) == 0:
            tn_eff //= 2
        else:
            break

    # ---- M (batch): one tile whenever it fits -> W_dec streamed exactly once ----
    sub = _sublane_multiple(x.dtype)
    w_buf = 2 * tn_eff * tk_eff * w_bytes
    per_row = 2 * tk_eff * x_bytes + 2 * tn_eff * o_bytes + (0 if accumulate_in_out else tn_eff * 4)
    rows_fit = max(sub, (budget - w_buf) // per_row)
    tm_cap = rows_fit if tm is None else min(tm, rows_fit)
    if M <= tm_cap:
        tm_eff, M_pad = M, M                          # single M tile (full-dim block)
    else:
        tm_eff = max(sub, (tm_cap // sub) * sub)
        if tm_eff >= 512:
            tm_eff = (tm_eff // 256) * 256            # MXU-friendly row count
        M_pad = _round_up(M, tm_eff)

    # ---- Padding (only x / b in the common case; W only for large ragged dims) ----
    if (M_pad, K_pad) != (M, K):
        x = jnp.pad(x, ((0, M_pad - M), (0, K_pad - K)))
    if (N_pad, K_pad) != (N, K):
        w_dec = jnp.pad(w_dec, ((0, N_pad - N), (0, K_pad - K)))
    if N_pad != N:
        b_dec = jnp.pad(b_dec, (0, N_pad - N))
    b2d = b_dec.reshape(1, N_pad)

    grid = (M_pad // tm_eff, N_pad // tn_eff, K_pad // tk_eff)
    kernel = _make_decoder_kernel(accumulate_in_out, compute_dtype)
    scratch = [] if accumulate_in_out else [pltpu.VMEM((tm_eff, tn_eff), jnp.float32)]

    out = pl.pallas_call(
        kernel,
        out_shape=jax.ShapeDtypeStruct((M_pad, N_pad), out_dtype),
        grid_spec=pltpu.PrefetchScalarGridSpec(
            num_scalar_prefetch=0,
            grid=grid,
            in_specs=[
                pl.BlockSpec((tm_eff, tk_eff), lambda i, j, k: (i, k)),  # x tile
                pl.BlockSpec((tn_eff, tk_eff), lambda i, j, k: (j, k)),  # W_dec tile (N, K)
                pl.BlockSpec((1, tn_eff), lambda i, j, k: (0, j)),       # bias tile
            ],
            # Output index_map ignores k -> block stays resident across the K
            # (reduction, last) grid axis; accumulation relies on this.
            out_specs=pl.BlockSpec((tm_eff, tn_eff), lambda i, j, k: (i, j)),
            scratch_shapes=scratch,
        ),
        compiler_params=pltpu.CompilerParams(
            dimension_semantics=("parallel", "parallel", "arbitrary"),
            vmem_limit_bytes=vmem_limit,
        ),
        cost_estimate=pl.CostEstimate(
            flops=2 * M * N * K,
            transcendentals=0,
            bytes_accessed=(
                N_pad * K_pad * w_bytes * grid[0]      # W_dec streamed once per M tile
                + M_pad * K_pad * x_bytes * grid[1]    # x re-read once per N tile
                + M_pad * N_pad * o_bytes              # output write
                + N_pad * 4                            # bias
            ),
        ),
    )(x, w_dec, b2d)

    if (M_pad, N_pad) != (M, N):
        out = out[:M, :N]
    return out


def init_decoder_params(key, d_in, d_sae, init_norm=1.0, dtype=jnp.float32):
    """Re-implementation of Decoder.__init__: each column of W_dec (d_in, d_sae) is a
    standard normal vector normalized to unit L2 norm along d_in, scaled by init_norm;
    b_dec = 0."""
    w = jax.random.normal(key, (d_in, d_sae), dtype=jnp.float32)
    w = w / jnp.linalg.norm(w, axis=0, keepdims=True)
    w = (w * init_norm).astype(dtype)
    b = jnp.zeros((d_in,), dtype=dtype)
    return w, b


# TODO(synk): normalise() / adjust_gradients_to_normalise() are parameter-management
# helpers outside the forward pass; they are plain JAX ops and not kernelized here.

if __name__ == "__main__":
    key = jax.random.PRNGKey(0)
    k_w, k_x, k_b = jax.random.split(key, 3)

    # 1) Small aligned shapes (batch=64, d_sae=256, d_in=128): exact f32 path.
    batch, d_sae, d_in = 64, 256, 128
    W_dec, b_dec = init_decoder_params(k_w, d_in, d_sae, init_norm=0.5)
    b_dec = 0.01 * jax.random.normal(k_b, (d_in,), dtype=jnp.float32)  # non-trivial bias
    x = jax.random.normal(k_x, (batch, d_sae), dtype=jnp.float32)
    ref = x @ W_dec.T + b_dec
    out = jax.block_until_ready(decoder_forward(x, W_dec, b_dec))
    assert out.shape == (batch, d_in)
    assert jnp.allclose(out, ref, atol=1e-3, rtol=1e-3), "f32 mismatch vs reference"

    # 2) Ragged shapes: exercised without any padding of W_dec (full-dim K/N blocks).
    k_w2, k_x2 = jax.random.split(jax.random.PRNGKey(1))
    W2, bias2 = init_decoder_params(k_w2, 72, 200, init_norm=1.0)
    x2 = jax.random.normal(k_x2, (100, 200), dtype=jnp.float32)
    out2 = jax.block_until_ready(decoder_forward(x2, W2, bias2))
    assert out2.shape == (100, 72)
    assert jnp.allclose(out2, x2 @ W2.T + bias2, atol=1e-3, rtol=1e-3), "ragged mismatch"

    # 3) Multi-tile grid (small explicit tiles): K accumulation + bias at last k + M padding.
    k_w3, k_x3 = jax.random.split(jax.random.PRNGKey(2))
    W3, _ = init_decoder_params(k_w3, 512, 1024, init_norm=1.0)
    b3 = 0.05 * jax.random.normal(jax.random.PRNGKey(3), (512,), dtype=jnp.float32)
    x3 = jax.random.normal(k_x3, (40, 1024), dtype=jnp.float32)
    out3 = jax.block_until_ready(decoder_forward(x3, W3, b3, tm=16, tn=128, tk=256))
    assert out3.shape == (40, 512)
    assert jnp.allclose(out3, x3 @ W3.T + b3, atol=1e-3, rtol=1e-3), "multi-tile mismatch"

    # 4) bf16 weight storage (real HBM saving) + bf16 activations (scratch-accumulator path).
    x4 = x.astype(jnp.bfloat16)
    out4 = jax.block_until_ready(decoder_forward(x4, W_dec, b_dec, weight_dtype=jnp.bfloat16))
    assert out4.shape == (batch, d_in)
    assert jnp.allclose(out4.astype(jnp.float32), ref, atol=0.1, rtol=0.05), "bf16 mismatch"

    print("KERNEL_OK")
</pallas_src>

<mosaic_0001>
module attributes {stable_mosaic.version = 11 : i64} {
  func.func @kernel(%arg0: i32, %arg1: i32, %arg2: i32, %arg3: memref<64x256xf32, #tpu.memory_space<vmem>>, %arg4: memref<128x256xf32, #tpu.memory_space<vmem>>, %arg5: memref<1x128xf32, #tpu.memory_space<vmem>>, %arg6: memref<64x128xf32, #tpu.memory_space<vmem>>) attributes {dimension_semantics = [#tpu.dimension_semantics<parallel>, #tpu.dimension_semantics<parallel>, #tpu.dimension_semantics<arbitrary>], iteration_bounds = array<i64: 1, 1, 1>, scalar_prefetch = 0 : i64, scratch_operands = 0 : i64, tpu.core_type = #tpu.core_type<tc>, window_params = [{transform_indices = @transform_0, window_bounds = array<i64: 64, 256>}, {transform_indices = @transform_1, window_bounds = array<i64: 128, 256>}, {transform_indices = @transform_2, window_bounds = array<i64: 1, 128>}, {transform_indices = @transform_3, window_bounds = array<i64: 64, 128>}]} {
    %c0_i32 = arith.constant 0 : i32
    %0 = arith.cmpi eq, %arg2, %c0_i32 : i32
    %1 = arith.extui %0 : i1 to i32
    %c0_i32_0 = arith.constant 0 : i32
    %2 = arith.cmpi ne, %1, %c0_i32_0 : i32
    scf.if %2 {
      %cst_10 = arith.constant 0.000000e+00 : f32
      %12 = vector.broadcast %cst_10 : f32 to vector<64x128xf32>
      %c0_11 = arith.constant 0 : index
      %c0_12 = arith.constant 0 : index
      %13 = vector.load %arg6[%c0_11, %c0_12] : memref<64x128xf32, #tpu.memory_space<vmem>>, vector<64x128xf32>
      tpu.vector_store %arg6[%c0_11, %c0_12], %12 {strides = array<i32>} : memref<64x128xf32, #tpu.memory_space<vmem>>, vector<64x128xf32>,
    } else {
    }
    %c0 = arith.constant 0 : index
    %c0_1 = arith.constant 0 : index
    %3 = vector.load %arg6[%c0, %c0_1] : memref<64x128xf32, #tpu.memory_space<vmem>>, vector<64x128xf32>
    %c0_2 = arith.constant 0 : index
    %c0_3 = arith.constant 0 : index
    %4 = vector.load %arg3[%c0_2, %c0_3] : memref<64x256xf32, #tpu.memory_space<vmem>>, vector<64x256xf32>
    %c0_4 = arith.constant 0 : index
    %c0_5 = arith.constant 0 : index
    %5 = vector.load %arg4[%c0_4, %c0_5] : memref<128x256xf32, #tpu.memory_space<vmem>>, vector<128x256xf32>
    %cst = arith.constant dense<0.000000e+00> : vector<64x128xf32>
    %6 = tpu.matmul %4, %5, %cst {dimension_numbers = #tpu.dot_dimension_numbers<[1], [1], [0], [0], [0, 0, 1, 0], [], []>} : vector<64x256xf32>, vector<128x256xf32>, vector<64x128xf32> -> vector<64x128xf32>
    %7 = arith.addf %3, %6 : vector<64x128xf32>
    %c0_6 = arith.constant 0 : index
    %c0_7 = arith.constant 0 : index
    %8 = vector.load %arg6[%c0_6, %c0_7] : memref<64x128xf32, #tpu.memory_space<vmem>>, vector<64x128xf32>
    tpu.vector_store %arg6[%c0_6, %c0_7], %7 {strides = array<i32>} : memref<64x128xf32, #tpu.memory_space<vmem>>, vector<64x128xf32>,
    %c0_i32_8 = arith.constant 0 : i32
    %9 = arith.cmpi eq, %arg2, %c0_i32_8 : i32
    %10 = arith.extui %9 : i1 to i32
    %c0_i32_9 = arith.constant 0 : i32
    %11 = arith.cmpi ne, %10, %c0_i32_9 : i32
    scf.if %11 {
      %c0_10 = arith.constant 0 : index
      %c0_11 = arith.constant 0 : index
      %12 = vector.load %arg6[%c0_10, %c0_11] : memref<64x128xf32, #tpu.memory_space<vmem>>, vector<64x128xf32>
      %c0_12 = arith.constant 0 : index
      %c0_13 = arith.constant 0 : index
      %13 = vector.load %arg5[%c0_12, %c0_13] : memref<1x128xf32, #tpu.memory_space<vmem>>, vector<1x128xf32>
      %14 = vector.broadcast %13 : vector<1x128xf32> to vector<64x128xf32>
      %15 = arith.addf %12, %14 : vector<64x128xf32>
      %c0_14 = arith.constant 0 : index
      %c0_15 = arith.constant 0 : index
      %16 = vector.load %arg6[%c0_14, %c0_15] : memref<64x128xf32, #tpu.memory_space<vmem>>, vector<64x128xf32>
      tpu.vector_store %arg6[%c0_14, %c0_15], %15 {strides = array<i32>} : memref<64x128xf32, #tpu.memory_space<vmem>>, vector<64x128xf32>,
    } else {
    }
    return
  }
  func.func @transform_0(%arg0: i32, %arg1: i32, %arg2: i32) -> (i32, i32) {
    %c0_i32 = arith.constant 0 : i32
    return %arg0, %arg2 : i32, i32
  }
  func.func @transform_1(%arg0: i32, %arg1: i32, %arg2: i32) -> (i32, i32) {
    %c0_i32 = arith.constant 0 : i32
    return %arg1, %arg2 : i32, i32
  }
  func.func @transform_2(%arg0: i32, %arg1: i32, %arg2: i32) -> (i32, i32) {
    %c0_i32 = arith.constant 0 : i32
    %c0_i32_0 = arith.constant 0 : i32
    return %c0_i32, %arg1 : i32, i32
  }
  func.func @transform_3(%arg0: i32, %arg1: i32, %arg2: i32) -> (i32, i32) {
    %c0_i32 = arith.constant 0 : i32
    return %arg0, %arg1 : i32, i32
  }
}

</mosaic_0001>

<bundles_post_ra>
// kernel: decoder_forward.1
= control target key start
LH: loop header
LB: loop body
LE: loop exit
PB: predicated region body
PF: predicated region fallthrough
CT: control target
= control target key end

     0   :  { %8 = vsyncpa [#allocation3], 0  ;;  %s479_s0 = inlined_call_operand.hbm [shape: f32[64,256], index: 0, kind: input, shape index: {}]   ;;  %s480_s1 = inlined_call_operand.hbm [shape: f32[128,256], index: 1, kind: input, shape index: {}]   ;;  %s481_s2 = inlined_call_operand.vmem [shape: f32[1,128], index: 2, kind: input, shape index: {}]   ;;  %s482_s3 = inlined_call_operand.hbm [shape: f32[64,128], index: 3, kind: output, shape index: {}]  }
   0x1   :  { %9 = vsyncpa [#allocation6], 0 }
   0x2   :  { %10 = vsyncpa [#allocation4], 0  ;;  %s413_s12 = smov [#allocation2]   ;;  %s341_s16 = scalar_lea.hbm %s479_s0, 2048 }
   0x3   :  { %s16_s13 = sshll.u32 %s413_s12, 4  ;;  %p342_p0 = scmp.ne.s32.totalorder %s479_s0, %s341_s16  ;;  %s17_s13 = int_to_ptr.vmem [resolvable:$true] %s16_s13 }
   0x4   :  { %p345_p1 = scmp.lt.u32.totalorder %s341_s16, %s479_s0 }
   0x6   :  { %p347_p2 = pnand %p345_p1, %p342_p0 }
   0x8   :  { %350 = shalt.err (!%p347_p2)
}
   0x9   :  { %s351_s21 = scalar_lea.vmem %s17_s13, 2048  ;;  %p356_p4 = scmp.lt.s32.totalorder %s17_s13, %s17_s13 }
   0xa   :  { %p352_p3 = scmp.ne.s32.totalorder %s17_s13, %s351_s21  ;;  %p357_p5 = scmp.lt.s32.totalorder %s351_s21, %s351_s21 }
   0xc   :  { %p358_p6 = por %p357_p5, %p356_p4 }
   0xe   :  { %p359_p7 = pnand %p358_p6, %p352_p3 }
  0x10   :  { %362 = shalt.err (!%p359_p7)
}
  0x11   :  { %s414_s22 = smov 256   ;;  %s415_s23 = smov 16  }
  0x12   :  { %22 = dma.hbm_to_vmem [thread:$0]  %s479_s0, 2048, %s17_s13, [#allocation3], %s414_s22, %s414_s22, %s415_s23  }
  0x13   :  { %s416_s26 = smov [#allocation5]   ;;  %s363_s30 = scalar_lea.hbm %s480_s1, 4096 }
  0x14   :  { %s28_s27 = sshll.u32 %s416_s26, 4  ;;  %p364_p8 = scmp.ne.s32.totalorder %s480_s1, %s363_s30  ;;  %s29_s27 = int_to_ptr.vmem [resolvable:$true] %s28_s27 }
  0x15   :  { %p367_p9 = scmp.lt.u32.totalorder %s363_s30, %s480_s1 }
  0x17   :  { %p369_p10 = pnand %p367_p9, %p364_p8 }
  0x19   :  { %372 = shalt.err (!%p369_p10)
}
  0x1a   :  { %s373_s8 = scalar_lea.vmem %s29_s27, 4096  ;;  %p378_p12 = scmp.lt.s32.totalorder %s29_s27, %s29_s27 }
  0x1b   :  { %p374_p11 = scmp.ne.s32.totalorder %s29_s27, %s373_s8  ;;  %p379_p13 = scmp.lt.s32.totalorder %s373_s8, %s373_s8 }
  0x1d   :  { %p380_p0 = por %p379_p13, %p378_p12 }
  0x1f   :  { %p381_p1 = pnand %p380_p0, %p374_p11 }
  0x21   :  { %384 = shalt.err (!%p381_p1)
}
  0x22   :  { %34 = dma.hbm_to_vmem [thread:$0]  %s480_s1, 4096, %s29_s27, [#allocation6], %s414_s22, %s414_s22, %s415_s23  }
  0x23   :  { %407 = dma.done.wait [#allocation3], 2048  }
  0x24   :  { %408 = vsyncadd [#allocation3], 4294965248 }
  0x25   :  { %409 = dma.done.wait [#allocation6], 4096  }
  0x26   :  { %410 = vsyncadd [#allocation6], 4294963200  ;;  %v80_v0 = vld [vmem:[#allocation5 + $0x8] sm:$0xff]  ;;  %v82_v1 = vld [vmem:[#allocation5 + $0x18] sm:$0xff] }
  0x27   :  { %v79_v2 = vld [vmem:[#allocation5] sm:$0xff]  ;;  %v285_v3 = vpack.c.bf16 %v82_v1, %v80_v0  ;;  %v81_v4 = vld [vmem:[#allocation5 + $0x10] sm:$0xff]  ;;  %v84_v5 = vld [vmem:[#allocation5 + $0x28] sm:$0xff] }
  0x28   :  { %v86_v6 = vld [vmem:[#allocation5 + $0x38] sm:$0xff]  ;;  %v287_v7 = vpack.c.bf16 %v81_v4, %v79_v2  ;;  %v83_v9 = vld [vmem:[#allocation5 + $0x20] sm:$0xff]  ;;  %v85_v10 = vld [vmem:[#allocation5 + $0x30] sm:$0xff] }
  0x29   :  { %v289_v8 = vpack.c.bf16 %v86_v6, %v84_v5  ;;  %286 = vmatprep.subr.bf16.mxu0 %v285_v3  ;;  %317 = vmatprep.subr.bf16.mxu1 %v285_v3  ;;  %v88_v11 = vld [vmem:[#allocation5 + $0x48] sm:$0xff]  ;;  %v90_v12 = vld [vmem:[#allocation5 + $0x58] sm:$0xff]  ;;  %v291_v13 = vpack.c.bf16 %v85_v10, %v83_v9  ;;  %v87_v17 = vld [vmem:[#allocation5 + $0x40] sm:$0xff] }
  0x2a   :  { %288 = vmatpush1.bf16.xpose.msra.mxu0 %v287_v7  ;;  %325 = vmatpush1.bf16.xpose.msra.mxu1 %v287_v7  ;;  %v293_v14 = vpack.c.bf16 %v90_v12, %v88_v11  ;;  %v64_v15 = vld [vmem:[#allocation2 + $0x8] sm:$0xff]  ;;  %v89_v18 = vld [vmem:[#allocation5 + $0x50] sm:$0xff]  ;;  %v94_v20 = vld [vmem:[#allocation5 + $0x78] sm:$0xff] }
  0x2b   :  { %290 = vmatprep.subr.bf16.mxu0 %v289_v8  ;;  %318 = vmatprep.subr.bf16.mxu1 %v289_v8  ;;  %v72_v16 = vld [vmem:[#allocation2 + $0x48] sm:$0xff]  ;;  %v295_v21 = vpack.c.bf16 %v89_v18, %v87_v17  ;;  %v91_v23 = vld [vmem:[#allocation5 + $0x60] sm:$0xff]  ;;  %v93_v24 = vld [vmem:[#allocation5 + $0x70] sm:$0xff] }
  0x2c   :  { %175 = vmatprep.mubr.f32.mxu0 %v64_v15  ;;  %v92_v19 = vld [vmem:[#allocation5 + $0x68] sm:$0xff]  ;;  %195 = vmatprep.mubr.f32.mxu1 %v72_v16  ;;  %v98_v26 = vld [vmem:[#allocation5 + $0x98] sm:$0xff]  ;;  %v299_v27 = vpack.c.bf16 %v93_v24, %v91_v23  ;;  %v95_v29 = vld [vmem:[#allocation5 + $0x80] sm:$0xff] }
  0x2d   :  { %v297_v22 = vpack.c.bf16 %v94_v20, %v92_v19  ;;  %v96_v25 = vld [vmem:[#allocation5 + $0x88] sm:$0xff]  ;;  %v97_v30 = vld [vmem:[#allocation5 + $0x90] sm:$0xff]  ;;  %v102_v32 = vld [vmem:[#allocation5 + $0xb8] sm:$0xff] }
  0x2e   :  { %v301_v28 = vpack.c.bf16 %v98_v26, %v96_v25  ;;  %v100_v31 = vld [vmem:[#allocation5 + $0xa8] sm:$0xff]  ;;  %v303_v33 = vpack.c.bf16 %v97_v30, %v95_v29  ;;  %v99_v35 = vld [vmem:[#allocation5 + $0xa0] sm:$0xff]  ;;  %v101_v36 = vld [vmem:[#allocation5 + $0xb0] sm:$0xff] }
  0x2f   :  { %v305_v34 = vpack.c.bf16 %v102_v32, %v100_v31  ;;  %v104_v37 = vld [vmem:[#allocation5 + $0xc8] sm:$0xff]  ;;  %v106_v38 = vld [vmem:[#allocation5 + $0xd8] sm:$0xff]  ;;  %v307_v39 = vpack.c.bf16 %v101_v36, %v99_v35  ;;  %v103_v41 = vld [vmem:[#allocation5 + $0xc0] sm:$0xff] }
  0x30   :  { %v309_v40 = vpack.c.bf16 %v106_v38, %v104_v37  ;;  %v105_v42 = vld [vmem:[#allocation5 + $0xd0] sm:$0xff]  ;;  %v108_v43 = vld [vmem:[#allocation5 + $0xe8] sm:$0xff]  ;;  %v110_v44 = vld [vmem:[#allocation5 + $0xf8] sm:$0xff] }
  0x31   :  { %v311_v45 = vpack.c.bf16 %v105_v42, %v103_v41  ;;  %v313_v46 = vpack.c.bf16 %v110_v44, %v108_v43  ;;  %v107_v47 = vld [vmem:[#allocation5 + $0xe0] sm:$0xff]  ;;  %v109_v48 = vld [vmem:[#allocation5 + $0xf0] sm:$0xff]  ;;  %v66_v52 = vld [vmem:[#allocation2 + $0x18] sm:$0xff] }
  0x32   :  { %292 = vmatpush1.bf16.xpose.msra.mxu0 %v291_v13  ;;  %326 = vmatpush1.bf16.xpose.msra.mxu1 %v291_v13  ;;  %v315_v49 = vpack.c.bf16 %v109_v48, %v107_v47  ;;  %v63_v50 = vld [vmem:[#allocation2] sm:$0xff]  ;;  %v74_v53 = vld [vmem:[#allocation2 + $0x58] sm:$0xff]  ;;  %v65_v54 = vld [vmem:[#allocation2 + $0x10] sm:$0xff] }
  0x33   :  { %294 = vmatprep.subr.bf16.mxu0 %v293_v14  ;;  %319 = vmatprep.subr.bf16.mxu1 %v293_v14  ;;  %v71_v51 = vld [vmem:[#allocation2 + $0x40] sm:$0xff]  ;;  %v73_v55 = vld [vmem:[#allocation2 + $0x50] sm:$0xff]  ;;  %v68_v56 = vld [vmem:[#allocation2 + $0x28] sm:$0xff] }
  0x34   :  { %v76_v57 = vld [vmem:[#allocation2 + $0x68] sm:$0xff]  ;;  %v67_v58 = vld [vmem:[#allocation2 + $0x20] sm:$0xff]  ;;  %v70_v60 = vld [vmem:[#allocation2 + $0x38] sm:$0xff] }
  0x35   :  { %v75_v59 = vld [vmem:[#allocation2 + $0x60] sm:$0xff]  ;;  %v78_v61 = vld [vmem:[#allocation2 + $0x78] sm:$0xff]  ;;  %v69_v62 = vld [vmem:[#allocation2 + $0x30] sm:$0xff] }
  0x36   :  { %v77_v63 = vld [vmem:[#allocation2 + $0x70] sm:$0xff]  ;;  %v284_v1 = vld [vmem:[%s481_s2] ss:$0 sm:$0xff]  ;;  %s417_s2 = smov [#allocation7]  }
  0x37   :  { %s271_s11 = sshll.u32 %s417_s2, 4  ;;  %s272_s11 = int_to_ptr.vmem [resolvable:$true] %s271_s11 }
  0x38   :  { %s385_s12 = scalar_lea.vmem %s272_s11, 1024  ;;  %p390_p3 = scmp.lt.s32.totalorder %s272_s11, %s272_s11 }
  0x39   :  { %p386_p2 = scmp.ne.s32.totalorder %s272_s11, %s385_s12  ;;  %p391_p4 = scmp.lt.s32.totalorder %s385_s12, %s385_s12 }
  0x3a   :  { %296 = vmatpush1.bf16.xpose.msra.mxu0 %v295_v21  ;;  %327 = vmatpush1.bf16.xpose.msra.mxu1 %v295_v21 }
  0x3b   :  { %298 = vmatprep.subr.bf16.mxu0 %v297_v22  ;;  %320 = vmatprep.subr.bf16.mxu1 %v297_v22  ;;  %p392_p5 = por %p391_p4, %p390_p3 }
  0x3d   :  { %p393_p6 = pnand %p392_p5, %p386_p2 }
  0x42   :  { %300 = vmatpush1.bf16.xpose.msra.mxu0 %v299_v27  ;;  %328 = vmatpush1.bf16.xpose.msra.mxu1 %v299_v27 }
  0x43   :  { %302 = vmatprep.subr.bf16.mxu0 %v301_v28  ;;  %321 = vmatprep.subr.bf16.mxu1 %v301_v28 }
  0x4a   :  { %304 = vmatpush1.bf16.xpose.msra.mxu0 %v303_v33  ;;  %329 = vmatpush1.bf16.xpose.msra.mxu1 %v303_v33 }
  0x4b   :  { %306 = vmatprep.subr.bf16.mxu0 %v305_v34  ;;  %322 = vmatprep.subr.bf16.mxu1 %v305_v34 }
  0x52   :  { %308 = vmatpush1.bf16.xpose.msra.mxu0 %v307_v39  ;;  %330 = vmatpush1.bf16.xpose.msra.mxu1 %v307_v39 }
  0x53   :  { %310 = vmatprep.subr.bf16.mxu0 %v309_v40  ;;  %323 = vmatprep.subr.bf16.mxu1 %v309_v40 }
  0x5a   :  { %312 = vmatpush1.bf16.xpose.msra.mxu0 %v311_v45  ;;  %331 = vmatpush1.bf16.xpose.msra.mxu1 %v311_v45 }
  0x5b   :  { %314 = vmatprep.subr.bf16.mxu0 %v313_v46  ;;  %324 = vmatprep.subr.bf16.mxu1 %v313_v46 }
  0x62   :  { %316 = vmatpush1.bf16.xpose.msra.mxu0 %v315_v49  ;;  %332 = vmatpush1.bf16.xpose.msra.mxu1 %v315_v49 }
  0x69   :  { %176 = vmatmul.mubr.f32.vlgmr.msra.gmra.mrb[0].mxu0 %v63_v50  ;;  %196 = vmatmul.mubr.f32.vlgmr.msra.gmra.mrb[0].mxu1 %v71_v51 }
  0x6a   :  { %180 = vmatprep.mubr.f32.mxu0 %v66_v52  ;;  %200 = vmatprep.mubr.f32.mxu1 %v74_v53 }
  0x6d   :  { %181 = vmatmul.mubr.f32.gmra.mrb[2].mxu0 %v65_v54  ;;  %201 = vmatmul.mubr.f32.gmra.mrb[2].mxu1 %v73_v55 }
  0x6e   :  { %185 = vmatprep.mubr.f32.mxu0 %v68_v56  ;;  %205 = vmatprep.mubr.f32.mxu1 %v76_v57 }
  0x71   :  { %186 = vmatmul.mubr.f32.gmra.mrb[4].mxu0 %v67_v58  ;;  %206 = vmatmul.mubr.f32.gmra.mrb[4].mxu1 %v75_v59 }
  0x72   :  { %190 = vmatprep.mubr.f32.mxu0 %v70_v60  ;;  %210 = vmatprep.mubr.f32.mxu1 %v78_v61 }
  0x75   :  { %191 = vmatmul.mubr.f32.gmra.mrb[6].mxu0 %v69_v62  ;;  %211 = vmatmul.mubr.f32.gmra.mrb[6].mxu1 %v77_v63 }
 0x13c   :  { %v177_v0 = vpop.f32.mrb[0].mxu0  ;;  %v197_v2 = vpop.f32.mrb[0].mxu1 }
 0x13d   :  { %v179_v3 = vpop.f32.mrb[1].mxu0  ;;  %v199_v4 = vpop.f32.mrb[1].mxu1  ;;  %v250_v5 = vadd.f32 %v284_v1, %v177_v0  ;;  %v254_v6 = vadd.f32 %v284_v1, %v197_v2 }
 0x13f   :  { %258 = vst [vmem:[#allocation7] sm:$0xff] %v250_v5  ;;  %262 = vst [vmem:[#allocation7 + $0x20] sm:$0xff] %v254_v6 }
 0x140   :  { %v182_v7 = vpop.f32.mrb[2].mxu0  ;;  %v202_v8 = vpop.f32.mrb[2].mxu1 }
 0x141   :  { %v184_v9 = vpop.f32.mrb[3].mxu0  ;;  %v204_v10 = vpop.f32.mrb[3].mxu1  ;;  %v251_v11 = vadd.f32 %v284_v1, %v182_v7  ;;  %v255_v12 = vadd.f32 %v284_v1, %v202_v8 }
 0x143   :  { %259 = vst [vmem:[#allocation7 + $0x8] sm:$0xff] %v251_v11  ;;  %263 = vst [vmem:[#allocation7 + $0x28] sm:$0xff] %v255_v12 }
 0x144   :  { %v187_v13 = vpop.f32.mrb[4].mxu0  ;;  %v207_v14 = vpop.f32.mrb[4].mxu1 }
 0x145   :  { %v189_v15 = vpop.f32.mrb[5].mxu0  ;;  %v209_v16 = vpop.f32.mrb[5].mxu1  ;;  %v252_v17 = vadd.f32 %v284_v1, %v187_v13  ;;  %v256_v18 = vadd.f32 %v284_v1, %v207_v14 }
 0x147   :  { %260 = vst [vmem:[#allocation7 + $0x10] sm:$0xff] %v252_v17  ;;  %264 = vst [vmem:[#allocation7 + $0x30] sm:$0xff] %v256_v18 }
 0x148   :  { %v192_v19 = vpop.f32.mrb[6].mxu0  ;;  %v212_v20 = vpop.f32.mrb[6].mxu1 }
 0x149   :  { %v194_v21 = vpop.f32.mrb[7].mxu0  ;;  %v214_v22 = vpop.f32.mrb[7].mxu1  ;;  %v253_v23 = vadd.f32 %v284_v1, %v192_v19  ;;  %v257_v24 = vadd.f32 %v284_v1, %v212_v20 }
 0x14b   :  { %261 = vst [vmem:[#allocation7 + $0x18] sm:$0xff] %v253_v23  ;;  %265 = vst [vmem:[#allocation7 + $0x38] sm:$0xff] %v257_v24 }
 0x14c   :  { %396 = shalt.err (!%p393_p6)
}
 0x14d   :  { %s397_s15 = scalar_lea.hbm %s482_s3, 1024 }
 0x14e   :  { %p398_p7 = scmp.ne.s32.totalorder %s482_s3, %s397_s15  ;;  %p401_p8 = scmp.lt.u32.totalorder %s397_s15, %s482_s3 }
 0x150   :  { %p403_p9 = pnand %p401_p8, %p398_p7 }
 0x152   :  { %406 = shalt.err (!%p403_p9)
}
 0x153   :  { %s418_s20 = smov 128   ;;  %s419_s21 = smov 8  }
 0x154   :  { %277 = dma.vmem_to_hbm [thread:$0]  %s272_s11, 1024, %s482_s3, [#allocation4], %s418_s20, %s418_s20, %s419_s21  }
 0x155   :  { %411 = dma.done.wait [#allocation4], 1024  }
 0x156   :  { %412 = vsyncadd [#allocation4], 4294966272 }
 0x157   :  { %281 = vsyncpa [#allocation3], 1 }
 0x158   :  { %282 = vsyncpa [#allocation6], 1 }
 0x159   :  { %283 = vsyncpa [#allocation4], 1 }

</bundles_post_ra>
